<compile_context>
chip_gen: v5e
topology: v5e:2x2
jax: 0.10.0
libtpu: 0.0.40
codegen_flags: <defaults>
</compile_context>

<pallas_src>
import jax
import jax.numpy as jnp
from jax import lax
from jax.experimental import pallas as pl
from jax.experimental.pallas import tpu as pltpu


# ------------------------------------------------------------------
# Hardware / tile-size helpers
# ------------------------------------------------------------------
def _vmem_cap_bytes():
    """~75% of this generation's per-core VMEM (v7x: 64 MiB, v5e/v6e: 128 MiB)."""
    try:
        cap = int(pltpu.get_tpu_info().vmem_capacity_bytes)
    except Exception:
        cap = 64 << 20  # conservative fallback (v7x per-TC)
    return cap * 3 // 4


def _vmem_limit(*block_bytes):
    """Scoped-VMEM limit sized from the actual double-buffered blocks."""
    need = 2 * sum(int(b) for b in block_bytes) + (4 << 20)
    return int(min(max(need, 16 << 20), _vmem_cap_bytes()))


def _choose_batch_tile(B, F, itemsize, *, target, align=8, min_tiles=2):
    """Batch tile for the elementwise kernels.

    Multiple of `align` (8 for f32, 32 when a packed int8 mask shares the grid),
    at most ~B/min_tiles so megacore (v7x) gets >=2 tiles, and fitting `target`
    bytes per block.
    """
    if B <= align:
        return B
    tb = (B // max(min_tiles, 1)) // align * align
    tb = max(align, min(tb, 2048))
    while tb > align and tb * F * itemsize > target:
        tb = max(align, (tb // 2) // align * align)
    return tb


def _choose_forward_all_tiles(B, F, itemsize):
    """(TB, TI) for forward_all: big output blocks, but >=2 grid steps overall."""
    rows = F + 1
    target = min(16 << 20, _vmem_cap_bytes() // 3)     # double-buffered fits VMEM
    per_batch = rows * F * itemsize                    # output bytes per batch elem
    if B <= 8:
        tb = B
    else:
        tb_fit = max(8, (target // max(per_batch, 1)) // 8 * 8)
        tb_half = max(8, (B // 2) // 8 * 8)            # keep >=2 batch tiles
        tb = max(8, min(tb_fit, tb_half, 128))
    if tb * per_batch <= target:
        ti = rows
    else:
        ti = max(8, (target // (tb * F * itemsize)) // 8 * 8)
        ti = min(ti, rows)
    # If the grid collapses to a single step, split rows so v7x megacore has 2 tiles.
    if -(-B // tb) == 1 and -(-rows // ti) == 1 and rows > 8:
        ti = max(8, -(-((rows + 1) // 2) // 8) * 8)
    return tb, ti


# ------------------------------------------------------------------
# Kernels
# ------------------------------------------------------------------
def _mask_kernel(x_ref, m_ref, o_ref):
    # forward_mask(): x * mask.  m_ref is (1, F) (broadcast) or (TB, F), any dtype;
    # cast happens here so the mask travels narrow through HBM.
    x = x_ref[...]
    o_ref[...] = x * m_ref[...].astype(x.dtype)


def _neck_kernel(n_ref, x_ref, o_ref):
    # forward_neck(): mask = (arange(1, F+1) <= n_open), applied per-feature.
    x = x_ref[...]                                            # (TB, F)
    n_open = n_ref[0]                                         # scalar from SMEM
    col = lax.broadcasted_iota(jnp.int32, x.shape, 1) + 1     # 1..F along features
    o_ref[...] = x * (col <= n_open).astype(x.dtype)


def _forward_all_kernel(x_ref, o_ref):
    # forward_all(): out[b, i, j] = x[b, j] * (j < i), tiled over (batch, rows).
    # Row dim is strip-mined so the live (chunk, F) mask slab stays ~<=16 vregs.
    x = x_ref[...]                                            # (TB, F)
    tb, ti, f = o_ref.shape
    row0 = pl.program_id(1) * ti                              # absolute row offset
    chunk = min(ti, max(8, (16384 // max(f, 1)) // 8 * 8))    # static, multiple of 8
    for c0 in range(0, ti, chunk):                            # static loop
        cc = min(chunk, ti - c0)
        row = lax.broadcasted_iota(jnp.int32, (cc, f), 0) + (row0 + c0)
        col = lax.broadcasted_iota(jnp.int32, (cc, f), 1)
        keep = (col < row).astype(x.dtype)                    # strict lower tri
        o_ref[:, c0:c0 + cc, :] = x[:, None, :] * keep[None, :, :]


# ------------------------------------------------------------------
# Wrappers
# ------------------------------------------------------------------
class IOBLayerPallas:
    def __init__(self, num_features: int):
        self.num_features = num_features

    # Fully-open bottleneck == nn.Identity; a copy kernel would only burn HBM BW.
    def forward(self, x):
        return x

    def forward_mask(self, x, mask):
        B, F = x.shape
        itemsize = jnp.dtype(x.dtype).itemsize

        mask = jnp.asarray(mask)
        if mask.ndim == 1:
            mask = mask.reshape(1, F)
        if mask.dtype == jnp.bool_:
            mask = mask.astype(jnp.int8)        # narrow; cast to x.dtype in-kernel
        m_item = jnp.dtype(mask.dtype).itemsize

        narrow_2d = (mask.shape[0] != 1) and (m_item < itemsize)
        align = 32 if narrow_2d else 8          # packed sublane tiling for int8
        target = min(8 << 20, _vmem_cap_bytes() // 8)
        tb = _choose_batch_tile(B, F, itemsize, target=target, align=align)
        grid = (pl.cdiv(B, tb),)

        if mask.shape[0] == 1:
            # single resident (1, F) mask block, reused by every batch tile
            m_spec = pl.BlockSpec((1, F), lambda b: (0, 0))
            m_bytes = F * m_item
        else:
            m_spec = pl.BlockSpec((tb, F), lambda b: (b, 0))
            m_bytes = tb * F * m_item

        x_bytes = tb * F * itemsize
        cost = pl.CostEstimate(flops=B * F, transcendentals=0,
                               bytes_accessed=2 * B * F * itemsize + B * F * m_item)
        return pl.pallas_call(
            _mask_kernel,
            out_shape=jax.ShapeDtypeStruct((B, F), x.dtype),
            grid_spec=pltpu.PrefetchScalarGridSpec(
                num_scalar_prefetch=0,
                grid=grid,
                in_specs=[pl.BlockSpec((tb, F), lambda b: (b, 0)), m_spec],
                out_specs=pl.BlockSpec((tb, F), lambda b: (b, 0)),
            ),
            compiler_params=pltpu.CompilerParams(
                dimension_semantics=("parallel",),
                vmem_limit_bytes=_vmem_limit(x_bytes, m_bytes, x_bytes),
            ),
            cost_estimate=cost,
        )(x, mask)

    def forward_neck(self, x, n_open: int):
        B, F = x.shape
        itemsize = jnp.dtype(x.dtype).itemsize
        target = min(8 << 20, _vmem_cap_bytes() // 8)
        tb = _choose_batch_tile(B, F, itemsize, target=target)
        grid = (pl.cdiv(B, tb),)
        n_arr = jnp.asarray([n_open], dtype=jnp.int32)
        tile_bytes = tb * F * itemsize
        cost = pl.CostEstimate(flops=2 * B * F, transcendentals=0,
                               bytes_accessed=2 * B * F * itemsize)
        return pl.pallas_call(
            _neck_kernel,
            out_shape=jax.ShapeDtypeStruct((B, F), x.dtype),
            grid_spec=pltpu.PrefetchScalarGridSpec(
                num_scalar_prefetch=1,                     # n_open lands in SMEM
                grid=grid,
                in_specs=[pl.BlockSpec((tb, F), lambda b, n: (b, 0))],
                out_specs=pl.BlockSpec((tb, F), lambda b, n: (b, 0)),
            ),
            compiler_params=pltpu.CompilerParams(
                dimension_semantics=("parallel",),
                vmem_limit_bytes=_vmem_limit(tile_bytes, tile_bytes),
            ),
            cost_estimate=cost,
        )(n_arr, x)

    def forward_all(self, x):
        B, F = x.shape
        itemsize = jnp.dtype(x.dtype).itemsize
        tb, ti = _choose_forward_all_tiles(B, F, itemsize)
        grid = (pl.cdiv(B, tb), pl.cdiv(F + 1, ti))
        out_bytes = tb * ti * F * itemsize
        x_bytes = tb * F * itemsize
        cost = pl.CostEstimate(
            flops=B * (F + 1) * F,
            transcendentals=0,
            bytes_accessed=B * F * itemsize + B * (F + 1) * F * itemsize,
        )
        # TODO(synk): if F is not a multiple of 128, padding the feature dim to
        # 128 would give unmasked lane-dense stores; skipped to keep the exact
        # module output shape without an extra slice pass.
        return pl.pallas_call(
            _forward_all_kernel,
            out_shape=jax.ShapeDtypeStruct((B, F + 1, F), x.dtype),
            grid_spec=pltpu.PrefetchScalarGridSpec(
                num_scalar_prefetch=0,
                grid=grid,
                # x block ignores the row axis -> stays resident across row tiles
                in_specs=[pl.BlockSpec((tb, F), lambda b, i: (b, 0))],
                out_specs=pl.BlockSpec((tb, ti, F), lambda b, i: (b, i, 0)),
            ),
            compiler_params=pltpu.CompilerParams(
                # every output block is independent -> both axes legal as parallel
                dimension_semantics=("parallel", "parallel"),
                vmem_limit_bytes=_vmem_limit(out_bytes, x_bytes),
            ),
            cost_estimate=cost,
        )(x)


# ------------------------------------------------------------------
# References (plain JAX) for verification
# ------------------------------------------------------------------
def _ref_forward_all(x):
    B, F = x.shape
    xb = jnp.broadcast_to(x[:, None, :], (B, F + 1, F))
    row = jnp.arange(F + 1)[:, None]
    col = jnp.arange(F)[None, :]
    return jnp.where(col < row, xb, jnp.zeros((), x.dtype))


def _run_checks(key, B, F):
    kx, km = jax.random.split(key)
    x = jax.random.normal(kx, (B, F), dtype=jnp.float32)
    layer = IOBLayerPallas(F)

    # forward (identity)
    y_id = jax.block_until_ready(layer.forward(x))
    assert jnp.array_equal(y_id, x), "forward (identity) mismatch"

    # forward_mask with a (F,) bool mask
    mask1d = (jnp.arange(F) % 3 == 0)
    y_m1 = jax.block_until_ready(layer.forward_mask(x, mask1d))
    assert jnp.allclose(y_m1, x * mask1d.astype(x.dtype)), "forward_mask (F,) mismatch"

    # forward_mask with a (B, F) float mask
    mask2d = (jax.random.uniform(km, (B, F)) > 0.5).astype(x.dtype)
    y_m2 = jax.block_until_ready(layer.forward_mask(x, mask2d))
    assert jnp.allclose(y_m2, x * mask2d), "forward_mask (B,F) float mismatch"

    # forward_mask with a (B, F) bool mask (narrow dtype path)
    mask2b = jax.random.uniform(km, (B, F)) > 0.5
    y_m3 = jax.block_until_ready(layer.forward_mask(x, mask2b))
    assert jnp.allclose(y_m3, x * mask2b.astype(x.dtype)), "forward_mask (B,F) bool mismatch"

    # forward_neck
    n_open = max(1, F // 3)
    y_neck = jax.block_until_ready(layer.forward_neck(x, n_open))
    ref_neck = x * (jnp.arange(1, F + 1) <= n_open).astype(x.dtype)
    assert jnp.allclose(y_neck, ref_neck), "forward_neck mismatch"

    # forward_all
    y_all = jax.block_until_ready(layer.forward_all(x))
    assert y_all.shape == (B, F + 1, F)
    assert jnp.allclose(y_all, _ref_forward_all(x)), "forward_all mismatch"


if __name__ == "__main__":
    key = jax.random.PRNGKey(0)
    k1, k2 = jax.random.split(key)
    # Lane-dense case (F multiple of 128, batch tiled).
    _run_checks(k1, B=16, F=128)
    # Non-divisible case: B not a multiple of 8, F not a multiple of 128
    # (exercises partial tiles / OOB-padding semantics).
    _run_checks(k2, B=5, F=96)
    print("KERNEL_OK")
</pallas_src>

<mosaic_0001>
module attributes {stable_mosaic.version = 11 : i64} {
  func.func @_mask_kernel(%arg0: i32, %arg1: memref<8x128xf32, #tpu.memory_space<vmem>>, %arg2: memref<1x128xi8, #tpu.memory_space<vmem>>, %arg3: memref<8x128xf32, #tpu.memory_space<vmem>>) attributes {dimension_semantics = [#tpu.dimension_semantics<parallel>], iteration_bounds = array<i64: 2>, scalar_prefetch = 0 : i64, scratch_operands = 0 : i64, tpu.core_type = #tpu.core_type<tc>, window_params = [{transform_indices = @transform_0, window_bounds = array<i64: 8, 128>}, {pipeline_mode = #tpu.pipeline_mode<synchronous>, transform_indices = @transform_1, window_bounds = array<i64: 1, 128>}, {transform_indices = @transform_2, window_bounds = array<i64: 8, 128>}]} {
    %c0 = arith.constant 0 : index
    %c0_0 = arith.constant 0 : index
    %0 = vector.load %arg1[%c0, %c0_0] : memref<8x128xf32, #tpu.memory_space<vmem>>, vector<8x128xf32>
    %c0_1 = arith.constant 0 : index
    %c0_2 = arith.constant 0 : index
    %1 = vector.load %arg2[%c0_1, %c0_2] : memref<1x128xi8, #tpu.memory_space<vmem>>, vector<1x128xi8>
    %2 = arith.sitofp %1 : vector<1x128xi8> to vector<1x128xf32>
    %3 = vector.broadcast %2 : vector<1x128xf32> to vector<8x128xf32>
    %4 = arith.mulf %0, %3 : vector<8x128xf32>
    %c0_3 = arith.constant 0 : index
    %c0_4 = arith.constant 0 : index
    %5 = vector.load %arg3[%c0_3, %c0_4] : memref<8x128xf32, #tpu.memory_space<vmem>>, vector<8x128xf32>
    tpu.vector_store %arg3[%c0_3, %c0_4], %4 {strides = array<i32>} : memref<8x128xf32, #tpu.memory_space<vmem>>, vector<8x128xf32>,
    return
  }
  func.func @transform_0(%arg0: i32) -> (i32, i32) {
    %c0_i32 = arith.constant 0 : i32
    %c0_i32_0 = arith.constant 0 : i32
    return %arg0, %c0_i32 : i32, i32
  }
  func.func @transform_1(%arg0: i32) -> (i32, i32) {
    %c0_i32 = arith.constant 0 : i32
    %c0_i32_0 = arith.constant 0 : i32
    %c0_i32_1 = arith.constant 0 : i32
    return %c0_i32, %c0_i32_0 : i32, i32
  }
  func.func @transform_2(%arg0: i32) -> (i32, i32) {
    %c0_i32 = arith.constant 0 : i32
    %c0_i32_0 = arith.constant 0 : i32
    return %arg0, %c0_i32 : i32, i32
  }
}

</mosaic_0001>

<bundles_post_ra>
// kernel: tpu_custom_call.1
= control target key start
LH: loop header
LB: loop body
LE: loop exit
PB: predicated region body
PF: predicated region fallthrough
CT: control target
= control target key end

     0   :  { %7 = vsyncpa [#allocation3], 0  ;;  %s636_s0 = inlined_call_operand.hbm [shape: f32[16,128], index: 0, kind: input, shape index: {}]   ;;  %s637_s1 = inlined_call_operand.hbm [shape: s8[1,128], index: 1, kind: input, shape index: {}]   ;;  %s638_s2 = inlined_call_operand.hbm [shape: f32[16,128], index: 2, kind: output, shape index: {}]  }
   0x1   :  { %9 = vsyncpa [#allocation3 + $0x1], 0 }
   0x2   :  { %10 = vsyncpa [#allocation6], 0 }
   0x3   :  { %11 = vsyncpa [#allocation4], 0 }
   0x4   :  { %13 = vsyncpa [#allocation4 + $0x1], 0  ;;  %s498_s9 = smov 0   ;;  %s500_s10 = smov 0  }
   0x5   :  { %s502_s11 = smov 0   ;;  %s504_s12 = smov 0  }
   0x6 LB: > { %s519_s13 = sadd.s32 4294967295, %s480_s12   ;;  %s279_s14 = sadd.s32 4294967294, %s480_s12   ;;  %s480_s12 = sphi %s504_s12, %s648_s12   ;;  %s476_s11 = sphi %s502_s11, %s647_s11   ;;  %s472_s10 = sphi %s500_s10, %s646_s10   ;;  %s468_s9 = sphi %s498_s9, %s645_s9  }
   0x7   : > { %p39_p0 = scmp.ne.s32.totalorder %s472_s10, %s468_s9  ;;  %p40_p1 = scmp.eq.s32.totalorder %s519_s13, 0 }
   0x8   : > { %p84_p2 = scmp.eq.s32.totalorder %s519_s13, 1  ;;  %p90_p3 = scmp.eq.s32.totalorder %s279_s14, 1 }
   0x9   : > { %p528_p4 = por %p40_p1, %p39_p0  ;;  %p280_p5 = scmp.ge.s32.totalorder %s480_s12, 1 }
   0xa   : > { %p533_p6 = por %p90_p3, %p39_p0  ;;  %p97_p7 = scmp.lt.s32.totalorder %s480_s12, 3 }
   0xb   : > { %s109_s19 = sshll.u32 %s637_s1, 4  ;;  %s482_s21 = smov [#allocation5]   ;;  %s110_s19 = int_to_ptr.hbm [resolvable:$true] %s109_s19 }
   0xc   : > { %p541_p8 = pnand %p280_p5, %p97_p7  ;;  %s111_s22 = sshll.u32 %s482_s21, 4  ;;  %s112_s22 = int_to_ptr.vmem [resolvable:$true] %s111_s22 }
   0xd   : > { %s551_s23 = sadd.s32 1, %s480_s12   ;;  %s26_s24 = sadd.s32 1, %s476_s11 }
   0xe   : > { %p301_p10 = pneg %p541_p8  ;;  %s23_s25 = ssub.s32 %s480_s12, %s551_s23 }
   0xf   : > { %p24_p12 = scmp.eq.s32.totalorder %s23_s25, 0  ;;  %p33_p13 = scmp.ne.s32.totalorder %s476_s11, %s472_s10 }
  0x10   : > { %p302_p11 = pnand %p301_p10, %p40_p1  ;;  %p34_p0 = scmp.eq.s32.totalorder %s480_s12, 0 }
  0x11   : > { %s560_s26 = scalar_select %p24_p12, %s476_s11, %s26_s24  }
  0x12   : > { %304 = dma.hbm_to_vmem [thread:$0]  (!%p302_p11), %s110_s19, 16, %s112_s22, [#allocation6]  }
  0x13   : > { %p564_p3 = por %p84_p2, %p33_p13  ;;  %p314_p5 = scmp.lt.s32.totalorder %s480_s12, 2 }
  0x14   : > { %s122_s28 = sand.u32 1, %s476_s11   ;;  %s284_s29 = sshll.u32 %s480_s12, 3 }
  0x15   : > { %p35_p7 = por %p34_p0, %p33_p13  ;;  %s283_s30 = sshll.u32 %s122_s28, 3 }
  0x16   : > { %s130_s5 = scalar_lea.hbm %s636_s0, %s284_s29  ;;  %s126_s7 = scalar_lea.vmem [#allocation2], %s283_s30 }
  0x17   : > { %s132_s6 = sshll.u32 %s130_s5, 4  ;;  %s134_s8 = sshll.u32 %s126_s7, 4  ;;  %s133_s6 = int_to_ptr.hbm [resolvable:$true] %s132_s6  ;;  %s135_s8 = int_to_ptr.vmem [resolvable:$true] %s134_s8 }
  0x18   : > { %p574_p10 = pnand %p314_p5, %p35_p7  ;;  %s123_s17 = scalar_lea.sflag [#allocation3], %s122_s28 }
  0x19   : > { %s380_s18 = sshra.s32 %s133_s6, 4  ;;  %s387_s24 = scalar_lea.hbm %s636_s0, 16  ;;  %s381_s18 = int_to_ptr.hbm [resolvable:$true] %s380_s18 }
  0x1a   : > { %s382_s19 = scalar_lea.hbm %s381_s18, 8  ;;  %p384_p11 = pneg %p574_p10 }
  0x1b   : > { %p383_p2 = scmp.ne.s32.totalorder %s381_s18, %s382_s19  ;;  %p388_p0 = scmp.lt.s32.totalorder %s381_s18, %s636_s0 }
  0x1c   : > { %p389_p5 = scmp.lt.s32.totalorder %s387_s24, %s382_s19 }
  0x1d   : > { %p385_p12 = pnand %p384_p11, %p383_p2 }
  0x1e   : > { %p390_p7 = por %p389_p5, %p388_p0 }
  0x1f   : > { %p386_p13 = pneg %p385_p12 }
  0x21   : > { %p391_p9 = pnand %p390_p7, %p386_p13 }
  0x23   : > { %394 = shalt.err (!%p391_p9)
}
  0x24   : > { %308 = dma.hbm_to_vmem [thread:$0]  (!%p574_p10), %s133_s6, 128, %s135_s8, %s123_s17  }
  0x25   : > { %143 = sbr.rel (%p541_p8) target bundleno = 60 (0x3c), region = 28  ;;  %s591_s28 = sand.u32 (!%p541_p8), 1, %s472_s10  }
  0x26   : > { %s286_s30 = sshll.u32 (!%p541_p8), %s591_s28, 3  ;;  %s146_s3 = scalar_lea.sflag (!%p541_p8), [#allocation3], %s591_s28 }
  0x27   : > { %s149_s4 = scalar_lea.vmem (!%p541_p8), [#allocation2], %s286_s30 }
  0x2a   : > { %455 = dma.done.wait (%p528_p4), %s146_s3, 128  }
  0x2b   : > { %457 = vsyncadd (%p528_p4), %s146_s3, 4294967168 }
  0x2c   : > { %459 = dma.done.wait (%p40_p1), [#allocation6], 16  }
  0x2d   : > { %461 = vsyncadd (%p40_p1), [#allocation6], 4294967280  ;;  %s290_s20 = sshll.u32 %s519_s13, 3  ;;  %v177_v0 = vld [vmem:[#allocation5] sm:$0x1]  ;;  %v176_v3 = vld [vmem:[%s149_s4] sm:$0xff] }
  0x2e   : > { %v178_v1 = vunpack.c.0.s8 %v177_v0  ;;  %s194_s7 = scalar_lea.hbm %s638_s2, %s290_s20  ;;  %s175_s15 = scalar_lea.vmem [#allocation7], %s286_s30 }
  0x2f   : > { %s196_s8 = sshll.u32 %s175_s15, 4  ;;  %s198_s14 = sshll.u32 %s194_s7, 4  ;;  %s197_s8 = int_to_ptr.vmem [resolvable:$true] %s196_s8  ;;  %s199_s14 = int_to_ptr.hbm [resolvable:$true] %s198_s14 }
  0x30   : > { %v179_v2 = vcvt.s32.f32 %v178_v1  ;;  %s184_s17 = scalar_lea.sflag [#allocation4], %s591_s28  ;;  %s424_s18 = sshra.s32 %s199_s14, 4  ;;  %s425_s18 = int_to_ptr.hbm [resolvable:$true] %s424_s18 }
  0x31   : > { %s426_s13 = scalar_lea.hbm %s425_s18, 8  ;;  %s430_s22 = scalar_lea.hbm %s638_s2, 16 }
  0x32   : > { %v180_v4 = vperm.slane %v179_v2, 0  ;;  %p427_p1 = scmp.ne.s32.totalorder %s425_s18, %s426_s13  ;;  %p431_p9 = scmp.lt.s32.totalorder %s425_s18, %s638_s2 }
  0x33   : > { %p432_p10 = scmp.lt.s32.totalorder %s430_s22, %s426_s13 }
  0x34   : > { %v181_v5 = vmul.f32 %v180_v4, %v176_v3  ;;  %p428_p4 = pnand %p427_p1, %p564_p3 }
  0x35   : > { %p433_p2 = por %p432_p10, %p431_p9 }
  0x36   : > { %182 = vst [vmem:[%s175_s15] sm:$0xff] %v181_v5  ;;  %p429_p8 = pneg %p428_p4 }
  0x38   : > { %p434_p11 = pnand %p433_p2, %p429_p8 }
  0x3a   : > { %437 = shalt.err (!%p434_p11)
}
  0x3b   : > { %299 = dma.vmem_to_hbm [thread:$0]  (%p564_p3), %s197_s8, 128, %s199_s14, %s184_s17  }
  0x3c PF: > { %s210_s29 = sand.u32 1, %s468_s9   ;;  %p644_p12 = scmp.ge.s32.totalorder %s480_s12, 2 }
  0x3d   : > { %s211_s28 = scalar_lea.sflag [#allocation4], %s210_s29 }
  0x3e   : > { %p310_p13 = pnand %p644_p12, %p533_p6 }
  0x40   : > { %p311_p0 = pneg %p310_p13 }
  0x42   : > { %463 = dma.done.wait (%p311_p0), %s211_s28, 128  }
  0x43   : > { %465 = vsyncadd (%p311_p0), %s211_s28, 4294967168  ;;  %p16_p5 = scmp.ge.s32.totalorder %s551_s23, 4   ;;  %s645_s9 = smov %s472_s10 }
  0x44   : > { %s646_s10 = smov %s476_s11  ;;  %s647_s11 = smov %s560_s26 }
  0x45   : > { %s648_s12 = smov %s551_s23  ;;  %18 = sbr.rel (!%p16_p5) target bundleno = 6 (0x6), region = 77 }
  0x4a   :  { %217 = vsyncpa [#allocation3], 1 }
  0x4b   :  { %219 = vsyncpa [#allocation3 + $0x1], 1 }
  0x4c   :  { %220 = vsyncpa [#allocation6], 1 }
  0x4d   :  { %221 = vsyncpa [#allocation4], 1 }
  0x4e   :  { %223 = vsyncpa [#allocation4 + $0x1], 1 }

</bundles_post_ra>
